<compile_context>
chip_gen: v7x
topology: tpu7x:2x2x1
jax: 0.10.0
libtpu: 0.0.40
codegen_flags: <defaults>
</compile_context>

<pallas_src>
import jax
import jax.numpy as jnp
from jax.experimental import pallas as pl
from jax.experimental.pallas import tpu as pltpu


def _round_up(n, m):
    return ((n + m - 1) // m) * m


def ednet_kernel(x1_ref, x2_ref, w1_ref, b1_ref, w2_ref, b2_ref,
                 wd1a_ref, wd1b_ref, bd1_ref, wd2_ref, bd2_ref, out_ref):
    # Encoders: relu(xi @ Wi + bi)
    l1 = jnp.maximum(
        jnp.dot(x1_ref[...], w1_ref[...], preferred_element_type=jnp.float32)
        + b1_ref[...], 0.0)
    l2 = jnp.maximum(
        jnp.dot(x2_ref[...], w2_ref[...], preferred_element_type=jnp.float32)
        + b2_ref[...], 0.0)
    # decoder1 on the (virtual) concat: relu(l1 @ Wd1a + l2 @ Wd1b + bd1)
    h = jnp.maximum(
        jnp.dot(l1, wd1a_ref[...], preferred_element_type=jnp.float32)
        + jnp.dot(l2, wd1b_ref[...], preferred_element_type=jnp.float32)
        + bd1_ref[...], 0.0)
    # decoder2 (true 3-wide output; dense contiguous writeback)
    out_ref[...] = (
        jnp.dot(h, wd2_ref[...], preferred_element_type=jnp.float32)
        + bd2_ref[...])


def prepare_params(params):
    """One-time weight preprocessing (hoisted out of the per-call path)."""
    w1, b1, w2, b2, wd1, bd1, wd2, bd2 = params
    wd1_t = wd1.T                                   # (100, 50)
    return dict(
        w1=w1.T, b1=b1.reshape(1, 50),              # encoder_1
        w2=w2.T, b2=b2.reshape(1, 50),              # encoder_2
        wd1a=wd1_t[:50], wd1b=wd1_t[50:],           # decoder1 split at the concat
        bd1=bd1.reshape(1, 50),
        wd2=wd2.T, bd2=bd2.reshape(1, 3),           # decoder2 (true width 3)
    )


def ednet_forward(x1, x2, prep, *, tile_b=2048):
    """x1, x2: (B, 50) float32.  Returns (B, 3) float32."""
    B = x1.shape[0]

    # Batch tile: multiple of 8, no larger than needed, and (when the batch
    # allows) small enough that the grid has >= 2 tiles for v7x's dual TCs.
    tb = min(tile_b, _round_up(B, 8))
    if B > 8:
        tb = min(tb, _round_up((B + 1) // 2, 8))
    tb = max(tb, 8)
    grid_b = pl.cdiv(B, tb)

    flops = 2 * B * (50 * 50 + 50 * 50 + 100 * 50 + 50 * 3)
    bytes_accessed = 4 * (
        2 * B * 50 + B * 3                        # activations in / out
        + 2 * (50 * 50 + 50)                      # encoder weights + biases
        + 100 * 50 + 50                           # decoder1
        + 50 * 3 + 3)                             # decoder2

    xmap = lambda i: (i, 0)
    const = lambda i: (0, 0)   # weights/biases: VMEM-resident, no re-DMA
    out = pl.pallas_call(
        ednet_kernel,
        out_shape=jax.ShapeDtypeStruct((B, 3), jnp.float32),
        grid=(grid_b,),
        in_specs=[
            pl.BlockSpec((tb, 50), xmap),          # x1 tile
            pl.BlockSpec((tb, 50), xmap),          # x2 tile
            pl.BlockSpec((50, 50), const),         # encoder_1 W
            pl.BlockSpec((1, 50), const),          # encoder_1 b
            pl.BlockSpec((50, 50), const),         # encoder_2 W
            pl.BlockSpec((1, 50), const),          # encoder_2 b
            pl.BlockSpec((50, 50), const),         # decoder1 W (rows 0:50)
            pl.BlockSpec((50, 50), const),         # decoder1 W (rows 50:100)
            pl.BlockSpec((1, 50), const),          # decoder1 b
            pl.BlockSpec((50, 3), const),          # decoder2 W
            pl.BlockSpec((1, 3), const),           # decoder2 b
        ],
        out_specs=pl.BlockSpec((tb, 3), xmap),
        compiler_params=pltpu.CompilerParams(
            dimension_semantics=("parallel",)),
        cost_estimate=pl.CostEstimate(
            flops=flops, transcendentals=0, bytes_accessed=bytes_accessed),
    )(x1, x2, prep["w1"], prep["b1"], prep["w2"], prep["b2"],
      prep["wd1a"], prep["wd1b"], prep["bd1"], prep["wd2"], prep["bd2"])
    return out


def _init_params(key):
    """Deterministic synthetic init matching nn.Linear shapes (out, in)."""
    ks = jax.random.split(key, 8)

    def lin(kw, kb, out_f, in_f):
        bound = 1.0 / jnp.sqrt(in_f)
        w = jax.random.uniform(kw, (out_f, in_f), jnp.float32, -bound, bound)
        b = jax.random.uniform(kb, (out_f,), jnp.float32, -bound, bound)
        return w, b

    w1, b1 = lin(ks[0], ks[1], 50, 50)     # encoder_1
    w2, b2 = lin(ks[2], ks[3], 50, 50)     # encoder_2
    wd1, bd1 = lin(ks[4], ks[5], 50, 100)  # decoder1
    wd2, bd2 = lin(ks[6], ks[7], 3, 50)    # decoder2
    return (w1, b1, w2, b2, wd1, bd1, wd2, bd2)


def _reference(x1, x2, params):
    w1, b1, w2, b2, wd1, bd1, wd2, bd2 = params
    l1 = jax.nn.relu(x1 @ w1.T + b1)
    l2 = jax.nn.relu(x2 @ w2.T + b2)
    h = jax.nn.relu(jnp.concatenate([l1, l2], axis=1) @ wd1.T + bd1)
    return h @ wd2.T + bd2


if __name__ == "__main__":
    key = jax.random.PRNGKey(0)
    kp, kx1, kx2 = jax.random.split(key, 3)
    params = _init_params(kp)
    prep = prepare_params(params)

    # Small demo batch (single tile).
    B = 8
    x1 = jax.random.normal(kx1, (B, 50), jnp.float32)
    x2 = jax.random.normal(kx2, (B, 50), jnp.float32)
    out = jax.block_until_ready(ednet_forward(x1, x2, prep))
    ref = _reference(x1, x2, params)
    assert out.shape == (B, 3)
    assert jnp.allclose(out, ref, atol=1e-4, rtol=1e-4)

    # Multi-tile grid with a non-tile-aligned batch (exercises the partial
    # edge block: tb=152, grid=2, last tile's 4 out-of-bound rows are masked).
    B2 = 300
    kx3, kx4 = jax.random.split(kx2)
    y1 = jax.random.normal(kx3, (B2, 50), jnp.float32)
    y2 = jax.random.normal(kx4, (B2, 50), jnp.float32)
    out2 = jax.block_until_ready(ednet_forward(y1, y2, prep))
    ref2 = _reference(y1, y2, params)
    assert out2.shape == (B2, 3)
    assert jnp.allclose(out2, ref2, atol=1e-4, rtol=1e-4)

    print("KERNEL_OK")
</pallas_src>

<mosaic_0001>
module attributes {stable_mosaic.version = 11 : i64} {
  func.func @ednet_kernel(%arg0: i32, %arg1: memref<8x50xf32, #tpu.memory_space<vmem>>, %arg2: memref<8x50xf32, #tpu.memory_space<vmem>>, %arg3: memref<50x50xf32, #tpu.memory_space<vmem>>, %arg4: memref<1x50xf32, #tpu.memory_space<vmem>>, %arg5: memref<50x50xf32, #tpu.memory_space<vmem>>, %arg6: memref<1x50xf32, #tpu.memory_space<vmem>>, %arg7: memref<50x50xf32, #tpu.memory_space<vmem>>, %arg8: memref<50x50xf32, #tpu.memory_space<vmem>>, %arg9: memref<1x50xf32, #tpu.memory_space<vmem>>, %arg10: memref<50x3xf32, #tpu.memory_space<vmem>>, %arg11: memref<1x3xf32, #tpu.memory_space<vmem>>, %arg12: memref<8x3xf32, #tpu.memory_space<vmem>>) attributes {dimension_semantics = [#tpu.dimension_semantics<parallel>], iteration_bounds = array<i64: 1>, scalar_prefetch = 0 : i64, scratch_operands = 0 : i64, tpu.core_type = #tpu.core_type<tc>, window_params = [{transform_indices = @transform_0, window_bounds = array<i64: 8, 50>}, {transform_indices = @transform_1, window_bounds = array<i64: 8, 50>}, {pipeline_mode = #tpu.pipeline_mode<synchronous>, transform_indices = @transform_2, window_bounds = array<i64: 50, 50>}, {pipeline_mode = #tpu.pipeline_mode<synchronous>, transform_indices = @transform_3, window_bounds = array<i64: 1, 50>}, {pipeline_mode = #tpu.pipeline_mode<synchronous>, transform_indices = @transform_4, window_bounds = array<i64: 50, 50>}, {pipeline_mode = #tpu.pipeline_mode<synchronous>, transform_indices = @transform_5, window_bounds = array<i64: 1, 50>}, {pipeline_mode = #tpu.pipeline_mode<synchronous>, transform_indices = @transform_6, window_bounds = array<i64: 50, 50>}, {pipeline_mode = #tpu.pipeline_mode<synchronous>, transform_indices = @transform_7, window_bounds = array<i64: 50, 50>}, {pipeline_mode = #tpu.pipeline_mode<synchronous>, transform_indices = @transform_8, window_bounds = array<i64: 1, 50>}, {pipeline_mode = #tpu.pipeline_mode<synchronous>, transform_indices = @transform_9, window_bounds = array<i64: 50, 3>}, {pipeline_mode = #tpu.pipeline_mode<synchronous>, transform_indices = @transform_10, window_bounds = array<i64: 1, 3>}, {transform_indices = @transform_11, window_bounds = array<i64: 8, 3>}]} {
    %c0 = arith.constant 0 : index
    %c0_0 = arith.constant 0 : index
    %0 = vector.load %arg1[%c0, %c0_0] : memref<8x50xf32, #tpu.memory_space<vmem>>, vector<8x50xf32>
    %c0_1 = arith.constant 0 : index
    %c0_2 = arith.constant 0 : index
    %1 = vector.load %arg3[%c0_1, %c0_2] : memref<50x50xf32, #tpu.memory_space<vmem>>, vector<50x50xf32>
    %cst = arith.constant dense<0.000000e+00> : vector<8x50xf32>
    %2 = tpu.matmul %0, %1, %cst {dimension_numbers = #tpu.dot_dimension_numbers<[1], [0], [0], [1], [0, 0, 1, 1], [], []>} : vector<8x50xf32>, vector<50x50xf32>, vector<8x50xf32> -> vector<8x50xf32>
    %c0_3 = arith.constant 0 : index
    %c0_4 = arith.constant 0 : index
    %3 = vector.load %arg4[%c0_3, %c0_4] : memref<1x50xf32, #tpu.memory_space<vmem>>, vector<1x50xf32>
    %4 = vector.broadcast %3 : vector<1x50xf32> to vector<8x50xf32>
    %5 = arith.addf %2, %4 : vector<8x50xf32>
    %cst_5 = arith.constant 0.000000e+00 : f32
    %6 = vector.broadcast %cst_5 : f32 to vector<8x50xf32>
    %7 = arith.maximumf %5, %6 : vector<8x50xf32>
    %c0_6 = arith.constant 0 : index
    %c0_7 = arith.constant 0 : index
    %8 = vector.load %arg2[%c0_6, %c0_7] : memref<8x50xf32, #tpu.memory_space<vmem>>, vector<8x50xf32>
    %c0_8 = arith.constant 0 : index
    %c0_9 = arith.constant 0 : index
    %9 = vector.load %arg5[%c0_8, %c0_9] : memref<50x50xf32, #tpu.memory_space<vmem>>, vector<50x50xf32>
    %cst_10 = arith.constant dense<0.000000e+00> : vector<8x50xf32>
    %10 = tpu.matmul %8, %9, %cst_10 {dimension_numbers = #tpu.dot_dimension_numbers<[1], [0], [0], [1], [0, 0, 1, 1], [], []>} : vector<8x50xf32>, vector<50x50xf32>, vector<8x50xf32> -> vector<8x50xf32>
    %c0_11 = arith.constant 0 : index
    %c0_12 = arith.constant 0 : index
    %11 = vector.load %arg6[%c0_11, %c0_12] : memref<1x50xf32, #tpu.memory_space<vmem>>, vector<1x50xf32>
    %12 = vector.broadcast %11 : vector<1x50xf32> to vector<8x50xf32>
    %13 = arith.addf %10, %12 : vector<8x50xf32>
    %cst_13 = arith.constant 0.000000e+00 : f32
    %14 = vector.broadcast %cst_13 : f32 to vector<8x50xf32>
    %15 = arith.maximumf %13, %14 : vector<8x50xf32>
    %c0_14 = arith.constant 0 : index
    %c0_15 = arith.constant 0 : index
    %16 = vector.load %arg7[%c0_14, %c0_15] : memref<50x50xf32, #tpu.memory_space<vmem>>, vector<50x50xf32>
    %cst_16 = arith.constant dense<0.000000e+00> : vector<8x50xf32>
    %17 = tpu.matmul %7, %16, %cst_16 {dimension_numbers = #tpu.dot_dimension_numbers<[1], [0], [0], [1], [0, 0, 1, 1], [], []>} : vector<8x50xf32>, vector<50x50xf32>, vector<8x50xf32> -> vector<8x50xf32>
    %c0_17 = arith.constant 0 : index
    %c0_18 = arith.constant 0 : index
    %18 = vector.load %arg8[%c0_17, %c0_18] : memref<50x50xf32, #tpu.memory_space<vmem>>, vector<50x50xf32>
    %cst_19 = arith.constant dense<0.000000e+00> : vector<8x50xf32>
    %19 = tpu.matmul %15, %18, %cst_19 {dimension_numbers = #tpu.dot_dimension_numbers<[1], [0], [0], [1], [0, 0, 1, 1], [], []>} : vector<8x50xf32>, vector<50x50xf32>, vector<8x50xf32> -> vector<8x50xf32>
    %20 = arith.addf %17, %19 : vector<8x50xf32>
    %c0_20 = arith.constant 0 : index
    %c0_21 = arith.constant 0 : index
    %21 = vector.load %arg9[%c0_20, %c0_21] : memref<1x50xf32, #tpu.memory_space<vmem>>, vector<1x50xf32>
    %22 = vector.broadcast %21 : vector<1x50xf32> to vector<8x50xf32>
    %23 = arith.addf %20, %22 : vector<8x50xf32>
    %cst_22 = arith.constant 0.000000e+00 : f32
    %24 = vector.broadcast %cst_22 : f32 to vector<8x50xf32>
    %25 = arith.maximumf %23, %24 : vector<8x50xf32>
    %c0_23 = arith.constant 0 : index
    %c0_24 = arith.constant 0 : index
    %26 = vector.load %arg10[%c0_23, %c0_24] : memref<50x3xf32, #tpu.memory_space<vmem>>, vector<50x3xf32>
    %cst_25 = arith.constant dense<0.000000e+00> : vector<8x3xf32>
    %27 = tpu.matmul %25, %26, %cst_25 {dimension_numbers = #tpu.dot_dimension_numbers<[1], [0], [0], [1], [0, 0, 1, 1], [], []>} : vector<8x50xf32>, vector<50x3xf32>, vector<8x3xf32> -> vector<8x3xf32>
    %c0_26 = arith.constant 0 : index
    %c0_27 = arith.constant 0 : index
    %28 = vector.load %arg11[%c0_26, %c0_27] : memref<1x3xf32, #tpu.memory_space<vmem>>, vector<1x3xf32>
    %29 = vector.broadcast %28 : vector<1x3xf32> to vector<8x3xf32>
    %30 = arith.addf %27, %29 : vector<8x3xf32>
    %c0_28 = arith.constant 0 : index
    %c0_29 = arith.constant 0 : index
    %31 = vector.load %arg12[%c0_28, %c0_29] : memref<8x3xf32, #tpu.memory_space<vmem>>, vector<8x3xf32>
    tpu.vector_store %arg12[%c0_28, %c0_29], %30 {strides = array<i32>} : memref<8x3xf32, #tpu.memory_space<vmem>>, vector<8x3xf32>,
    return
  }
  func.func @transform_0(%arg0: i32) -> (i32, i32) {
    %c0_i32 = arith.constant 0 : i32
    %c0_i32_0 = arith.constant 0 : i32
    return %arg0, %c0_i32 : i32, i32
  }
  func.func @transform_1(%arg0: i32) -> (i32, i32) {
    %c0_i32 = arith.constant 0 : i32
    %c0_i32_0 = arith.constant 0 : i32
    return %arg0, %c0_i32 : i32, i32
  }
  func.func @transform_2(%arg0: i32) -> (i32, i32) {
    %c0_i32 = arith.constant 0 : i32
    %c0_i32_0 = arith.constant 0 : i32
    %c0_i32_1 = arith.constant 0 : i32
    return %c0_i32, %c0_i32_0 : i32, i32
  }
  func.func @transform_3(%arg0: i32) -> (i32, i32) {
    %c0_i32 = arith.constant 0 : i32
    %c0_i32_0 = arith.constant 0 : i32
    %c0_i32_1 = arith.constant 0 : i32
    return %c0_i32, %c0_i32_0 : i32, i32
  }
  func.func @transform_4(%arg0: i32) -> (i32, i32) {
    %c0_i32 = arith.constant 0 : i32
    %c0_i32_0 = arith.constant 0 : i32
    %c0_i32_1 = arith.constant 0 : i32
    return %c0_i32, %c0_i32_0 : i32, i32
  }
  func.func @transform_5(%arg0: i32) -> (i32, i32) {
    %c0_i32 = arith.constant 0 : i32
    %c0_i32_0 = arith.constant 0 : i32
    %c0_i32_1 = arith.constant 0 : i32
    return %c0_i32, %c0_i32_0 : i32, i32
  }
  func.func @transform_6(%arg0: i32) -> (i32, i32) {
    %c0_i32 = arith.constant 0 : i32
    %c0_i32_0 = arith.constant 0 : i32
    %c0_i32_1 = arith.constant 0 : i32
    return %c0_i32, %c0_i32_0 : i32, i32
  }
  func.func @transform_7(%arg0: i32) -> (i32, i32) {
    %c0_i32 = arith.constant 0 : i32
    %c0_i32_0 = arith.constant 0 : i32
    %c0_i32_1 = arith.constant 0 : i32
    return %c0_i32, %c0_i32_0 : i32, i32
  }
  func.func @transform_8(%arg0: i32) -> (i32, i32) {
    %c0_i32 = arith.constant 0 : i32
    %c0_i32_0 = arith.constant 0 : i32
    %c0_i32_1 = arith.constant 0 : i32
    return %c0_i32, %c0_i32_0 : i32, i32
  }
  func.func @transform_9(%arg0: i32) -> (i32, i32) {
    %c0_i32 = arith.constant 0 : i32
    %c0_i32_0 = arith.constant 0 : i32
    %c0_i32_1 = arith.constant 0 : i32
    return %c0_i32, %c0_i32_0 : i32, i32
  }
  func.func @transform_10(%arg0: i32) -> (i32, i32) {
    %c0_i32 = arith.constant 0 : i32
    %c0_i32_0 = arith.constant 0 : i32
    %c0_i32_1 = arith.constant 0 : i32
    return %c0_i32, %c0_i32_0 : i32, i32
  }
  func.func @transform_11(%arg0: i32) -> (i32, i32) {
    %c0_i32 = arith.constant 0 : i32
    %c0_i32_0 = arith.constant 0 : i32
    return %arg0, %c0_i32 : i32, i32
  }
}

</mosaic_0001>

<bundles_post_ra>
// kernel: tpu_custom_call.1
= control target key start
LH: loop header
LB: loop body
LE: loop exit
PB: predicated region body
PF: predicated region fallthrough
CT: control target
= control target key end

     0   :  { %16 = vsyncpa [#allocation3], 0  ;;  %s1064_s0 = inlined_call_operand.vmem [shape: f32[8,50], index: 0, kind: input, shape index: {}]   ;;  %s1065_s1 = inlined_call_operand.hbm [shape: f32[8,50], index: 1, kind: input, shape index: {}]   ;;  %s1066_s2 = inlined_call_operand.vmem [shape: f32[50,50], index: 2, kind: input, shape index: {}]   ;;  %s1067_s3 = inlined_call_operand.vmem [shape: f32[1,50], index: 3, kind: input, shape index: {}]   ;;  %s1068_s4 = inlined_call_operand.hbm [shape: f32[50,50], index: 4, kind: input, shape index: {}]   ;;  %s1069_s5 = inlined_call_operand.vmem [shape: f32[1,50], index: 5, kind: input, shape index: {}]   ;;  %s1070_s6 = inlined_call_operand.hbm [shape: f32[50,50], index: 6, kind: input, shape index: {}]   ;;  %s1071_s7 = inlined_call_operand.hbm [shape: f32[50,50], index: 7, kind: input, shape index: {}]   ;;  %s1072_s8 = inlined_call_operand.vmem [shape: f32[1,50], index: 8, kind: input, shape index: {}]   ;;  %s1073_s9 = inlined_call_operand.vmem [shape: f32[50,3], index: 9, kind: input, shape index: {}]   ;;  %s1074_s10 = inlined_call_operand.vmem [shape: f32[1,3], index: 10, kind: input, shape index: {}]   ;;  %s1075_s11 = inlined_call_operand.vmem [shape: f32[8,3], index: 11, kind: output, shape index: {}]  }
   0x1   :  { %17 = vsyncpa [#allocation5], 0 }
   0x2   :  { %18 = vsyncpa [#allocation8], 0  ;;  %s838_s17 = smov [#allocation4]   ;;  %s744_s21 = scalar_lea.hbm %s1068_s4, 896 }
   0x3   :  { %s40_s18 = sshll.u32 %s838_s17, 4  ;;  %p745_p0 = scmp.ne.s32.totalorder %s1068_s4, %s744_s21  ;;  %s41_s18 = int_to_ptr.vmem [resolvable:$true] %s40_s18 }
   0x4   :  { %p748_p1 = scmp.lt.u32.totalorder %s744_s21, %s1068_s4 }
   0x6   :  { %p750_p2 = pnand %p748_p1, %p745_p0 }
   0x8   :  { %753 = shalt.err (!%p750_p2)
}
   0x9   :  { %s754_s26 = scalar_lea.vmem %s41_s18, 896  ;;  %p759_p4 = scmp.lt.s32.totalorder %s41_s18, %s41_s18 }
   0xa   :  { %p755_p3 = scmp.ne.s32.totalorder %s41_s18, %s754_s26  ;;  %p760_p5 = scmp.lt.s32.totalorder %s754_s26, %s754_s26 }
   0xc   :  { %p761_p6 = por %p760_p5, %p759_p4 }
   0xe   :  { %p762_p7 = pnand %p761_p6, %p755_p3 }
  0x10   :  { %765 = shalt.err (!%p762_p7)
}
  0x11   :  { %s839_s27 = smov 128   ;;  %s840_s28 = smov 8  }
  0x12   :  { %46 = dma.hbm_to_vmem [thread:$0]  %s1068_s4, 896, %s41_s18, [#allocation5], %s839_s27, %s839_s27, %s840_s28  }
  0x13   :  { %s841_s12 = smov [#allocation2]   ;;  %s842_s14 = smov [#allocation6]  }
  0x14   :  { %s27_s13 = sshll.u32 %s841_s12, 4  ;;  %s54_s15 = sshll.u32 %s842_s14, 4  ;;  %s28_s13 = int_to_ptr.vmem [resolvable:$true] %s27_s13  ;;  %s55_s15 = int_to_ptr.vmem [resolvable:$true] %s54_s15 }
  0x15   :  { %s766_s19 = scalar_lea.hbm %s1065_s1, 128 }
  0x16   :  { %p767_p8 = scmp.ne.s32.totalorder %s1065_s1, %s766_s19  ;;  %p770_p9 = scmp.lt.u32.totalorder %s766_s19, %s1065_s1 }
  0x18   :  { %p772_p10 = pnand %p770_p9, %p767_p8 }
  0x1a   :  { %775 = shalt.err (!%p772_p10)
}
  0x1b   :  { %s776_s4 = scalar_lea.vmem %s28_s13, 128  ;;  %p781_p12 = scmp.lt.s32.totalorder %s28_s13, %s28_s13 }
  0x1c   :  { %p777_p11 = scmp.ne.s32.totalorder %s28_s13, %s776_s4  ;;  %p782_p13 = scmp.lt.s32.totalorder %s776_s4, %s776_s4 }
  0x1e   :  { %p783_p0 = por %p782_p13, %p781_p12 }
  0x20   :  { %p784_p1 = pnand %p783_p0, %p777_p11 }
  0x22   :  { %787 = shalt.err (!%p784_p1)
}
  0x23   :  { %30 = dma.hbm_to_vmem [thread:$0]  %s1065_s1, 128, %s28_s13, [#allocation3]  }
  0x24   :  { %s788_s29 = scalar_lea.hbm %s1070_s6, 896 }
  0x25   :  { %p789_p2 = scmp.ne.s32.totalorder %s1070_s6, %s788_s29  ;;  %p792_p3 = scmp.lt.u32.totalorder %s788_s29, %s1070_s6 }
  0x27   :  { %p794_p4 = pnand %p792_p3, %p789_p2 }
  0x29   :  { %797 = shalt.err (!%p794_p4)
}
  0x2a   :  { %s798_s17 = scalar_lea.vmem %s55_s15, 896  ;;  %p803_p6 = scmp.lt.s32.totalorder %s55_s15, %s55_s15 }
  0x2b   :  { %p799_p5 = scmp.ne.s32.totalorder %s55_s15, %s798_s17  ;;  %p804_p7 = scmp.lt.s32.totalorder %s798_s17, %s798_s17 }
  0x2d   :  { %p805_p8 = por %p804_p7, %p803_p6 }
  0x2f   :  { %p806_p9 = pnand %p805_p8, %p799_p5 }
  0x31   :  { %809 = shalt.err (!%p806_p9)
}
  0x32   :  { %60 = dma.hbm_to_vmem [thread:$0]  %s1070_s6, 896, %s55_s15, [#allocation5], %s839_s27, %s839_s27, %s840_s28  }
  0x33   :  { %s843_s19 = smov [#allocation7]   ;;  %s810_s23 = scalar_lea.hbm %s1071_s7, 896 }
  0x34   :  { %s66_s20 = sshll.u32 %s843_s19, 4  ;;  %p811_p10 = scmp.ne.s32.totalorder %s1071_s7, %s810_s23  ;;  %s67_s20 = int_to_ptr.vmem [resolvable:$true] %s66_s20 }
  0x35   :  { %p814_p11 = scmp.lt.u32.totalorder %s810_s23, %s1071_s7 }
  0x37   :  { %p816_p12 = pnand %p814_p11, %p811_p10 }
  0x39   :  { %819 = shalt.err (!%p816_p12)
}
  0x3a   :  { %s820_s26 = scalar_lea.vmem %s67_s20, 896  ;;  %p825_p0 = scmp.lt.s32.totalorder %s67_s20, %s67_s20 }
  0x3b   :  { %p821_p13 = scmp.ne.s32.totalorder %s67_s20, %s820_s26  ;;  %p826_p1 = scmp.lt.s32.totalorder %s820_s26, %s820_s26 }
  0x3d   :  { %p827_p2 = por %p826_p1, %p825_p0 }
  0x3f   :  { %p828_p3 = pnand %p827_p2, %p821_p13 }
  0x41   :  { %831 = shalt.err (!%p828_p3)
}
  0x42   :  { %72 = dma.hbm_to_vmem [thread:$0]  %s1071_s7, 896, %s67_s20, [#allocation8], %s839_s27, %s839_s27, %s840_s28  }
  0x43   :  { %832 = dma.done.wait [#allocation3], 128  }
  0x44   :  { %833 = vsyncadd [#allocation3], 4294967168 }
  0x45   :  { %834 = dma.done.wait [#allocation5], 1792  }
  0x46   :  { %835 = vsyncadd [#allocation5], 4294965504 }
  0x47   :  { %836 = dma.done.wait [#allocation8], 896  }
  0x48   :  { %837 = vsyncadd [#allocation8], 4294966400  ;;  %v844_v0 = vmov 0.0|0.0   ;;  %vm845_vm0 = vmmov 0   ;;  %v846_v1 = vmov 0.0   ;;  %v92_v2 = vld [vmem:[%s1066_s2] sm:$0xff] }
  0x49   :  { %690 = vmatprep.subr.bf16.mxu0 %v844_v0  ;;  %699 = vmatprep.subr.bf16.mxu1 %v844_v0  ;;  %v93_v3 = vld [vmem:[%s1066_s2 + $0x8] sm:$0xff]  ;;  %v187_v6 = vld [vmem:[#allocation4 + $0x8] sm:$0xff]  ;;  %v95_v8 = vld [vmem:[%s1066_s2 + $0x18] sm:$0xff]  ;;  %vm110_vm1 = vcmask 1041408   ;;  %vm106_vm2 = vcmask 408576   ;;  %vm542_vm3 = vcmask 23552  }
  0x4a   :  { %619 = vmatprep.mubr.msk.f32.mxu0 %vm845_vm0, %v846_v1  ;;  %636 = vmatprep.mubr.msk.f32.mxu1 %vm845_vm0, %v846_v1  ;;  %v186_v4 = vld [vmem:[#allocation4] sm:$0xff]  ;;  %v691_v5 = vpack.c.bf16 %v93_v3, %v92_v2  ;;  %v94_v7 = vld [vmem:[%s1066_s2 + $0x10] sm:$0xff]  ;;  %v188_v10 = vld [vmem:[#allocation4 + $0x10] sm:$0xff] }
  0x4b   :  { %v700_v9 = vpack.c.bf16 %v187_v6, %v186_v4  ;;  %v189_v11 = vld [vmem:[#allocation4 + $0x18] sm:$0xff]  ;;  %v694_v12 = vpack.c.bf16 %v95_v8, %v94_v7  ;;  %v97_v15 = vld [vmem:[%s1066_s2 + $0x28] sm:$0xff]  ;;  %v191_v17 = vld [vmem:[#allocation4 + $0x28] sm:$0xff] }
  0x4c   :  { %692 = vmatpush3.bf16.msra.mxu0 %v691_v5  ;;  %v703_v13 = vpack.c.bf16 %v189_v11, %v188_v10  ;;  %v96_v14 = vld [vmem:[%s1066_s2 + $0x20] sm:$0xff]  ;;  %v190_v16 = vld [vmem:[#allocation4 + $0x20] sm:$0xff]  ;;  %v284_v20 = vld [vmem:[#allocation7] sm:$0xff] }
  0x4d   :  { %701 = vmatpush3.bf16.msra.mxu1 %v700_v9  ;;  %693 = vmatprep.subr.bf16.mxu0 %v844_v0  ;;  %v697_v18 = vpack.c.bf16 %v97_v15, %v96_v14  ;;  %v706_v19 = vpack.c.bf16 %v191_v17, %v190_v16  ;;  %v285_v21 = vld [vmem:[#allocation7 + $0x8] sm:$0xff]  ;;  %v98_v22 = vld [vmem:[%s1066_s2 + $0x30] sm:$0x3]  ;;  %v278_v24 = vld [vmem:[#allocation6 + $0x8] sm:$0xff] }
  0x4e   :  { %702 = vmatprep.subr.bf16.mxu1 %v844_v0  ;;  %v277_v23 = vld [vmem:[#allocation6] sm:$0xff]  ;;  %v192_v25 = vld [vmem:[#allocation4 + $0x30] sm:$0x3]  ;;  %v709_v28 = vpack.c.bf16 %v285_v21, %v284_v20  ;;  %v286_v30 = vld [vmem:[#allocation7 + $0x10] sm:$0xff] }
  0x4f   :  { %v91_v26 = vld [vmem:[%s1064_s0] sm:$0xff]  ;;  %v718_v29 = vpack.c.bf16 %v278_v24, %v277_v23  ;;  %v287_v31 = vld [vmem:[#allocation7 + $0x18] sm:$0xff]  ;;  %v280_v33 = vld [vmem:[#allocation6 + $0x18] sm:$0xff] }
  0x50   :  { %695 = vmatpush3.bf16.msra.mxu0 %v694_v12  ;;  %v185_v27 = vld [vmem:[#allocation2] sm:$0xff]  ;;  %v279_v32 = vld [vmem:[#allocation6 + $0x10] sm:$0xff]  ;;  %v712_v34 = vpack.c.bf16 %v287_v31, %v286_v30  ;;  %v288_v36 = vld [vmem:[#allocation7 + $0x20] sm:$0xff] }
  0x51   :  { %704 = vmatpush3.bf16.msra.mxu1 %v703_v13  ;;  %696 = vmatprep.subr.bf16.mxu0 %v844_v0  ;;  %v721_v35 = vpack.c.bf16 %v280_v33, %v279_v32  ;;  %v289_v37 = vld [vmem:[#allocation7 + $0x28] sm:$0xff]  ;;  %v282_v40 = vld [vmem:[#allocation6 + $0x28] sm:$0xff]  ;;  %v283_v43 = vld [vmem:[#allocation6 + $0x30] sm:$0x3] }
  0x52   :  { %705 = vmatprep.subr.bf16.mxu1 %v844_v0  ;;  %v281_v38 = vld [vmem:[#allocation6 + $0x20] sm:$0xff]  ;;  %v715_v39 = vpack.c.bf16 %v289_v37, %v288_v36  ;;  %v290_v42 = vld [vmem:[#allocation7 + $0x30] sm:$0x3]  ;;  %v454_v57 = vld [vmem:[%s1073_s9 + $0x10] sm:$0xff] }
  0x53   :  { %v724_v41 = vpack.c.bf16 %v282_v40, %v281_v38  ;;  %v551_v44 = vld [vmem:[%s1067_s3] ss:$0 sm:$0xff]  ;;  %v453_v48 = vld [vmem:[%s1073_s9 + $0x8] sm:$0xff]  ;;  %v455_v58 = vld [vmem:[%s1073_s9 + $0x18] sm:$0xff] }
  0x54   :  { %698 = vmatpush3.bf16.msra.mxu0 %v697_v18  ;;  %v554_v45 = vld [vmem:[%s1069_s5] ss:$0 sm:$0xff]  ;;  %v730_v59 = vpack.c.bf16 %v455_v58, %v454_v57  ;;  %v457_v61 = vld [vmem:[%s1073_s9 + $0x28] sm:$0xff]  ;;  %v458_v63 = vld [vmem:[%s1073_s9 + $0x30] sm:$0x3] }
  0x55   :  { %707 = vmatpush3.bf16.msra.mxu1 %v706_v19  ;;  %617 = vmatprep.subr.mxu0 %v846_v1  ;;  %v452_v47 = vld [vmem:[%s1073_s9] sm:$0xff] }
  0x56   :  { %634 = vmatprep.subr.mxu1 %v846_v1  ;;  %v727_v55 = vpack.c.bf16 %v453_v48, %v452_v47  ;;  %v456_v60 = vld [vmem:[%s1073_s9 + $0x20] sm:$0xff] }
  0x57   :  { %v733_v62 = vpack.c.bf16 %v457_v61, %v456_v60  ;;  %v561_v3 = vld [vmem:[%s1072_s8] ss:$0 sm:$0xff] }
  0x58   :  { %618 = vmatpush3.msk.msra.mxu0 %vm110_vm1, %v98_v22 }
  0x59   :  { %635 = vmatpush3.msk.msra.mxu1 %vm110_vm1, %v192_v25  ;;  %620 = vmatmul.mubr.msk.f32.vlgmr.msra.gmra.mrb[0].mxu0 %vm106_vm2, %v91_v26 }
  0x5a   :  { %637 = vmatmul.mubr.msk.f32.vlgmr.msra.gmra.mrb[0].mxu1 %vm106_vm2, %v185_v27  ;;  %708 = vmatprep.subr.bf16.mxu0 %v844_v0 }
  0x5b   :  { %717 = vmatprep.subr.bf16.mxu1 %v844_v0  ;;  %710 = vmatpush3.bf16.msra.mxu0 %v709_v28 }
  0x5c   :  { %719 = vmatpush3.bf16.msra.mxu1 %v718_v29  ;;  %711 = vmatprep.subr.bf16.mxu0 %v844_v0 }
  0x5d   :  { %720 = vmatprep.subr.bf16.mxu1 %v844_v0  ;;  %653 = vmatprep.mubr.msk.f32.mxu0 %vm845_vm0, %v846_v1 }
  0x5e   :  { %670 = vmatprep.mubr.msk.f32.mxu1 %vm845_vm0, %v846_v1 }
  0x5f   :  { %713 = vmatpush3.bf16.msra.mxu0 %v712_v34 }
  0x60   :  { %722 = vmatpush3.bf16.msra.mxu1 %v721_v35  ;;  %714 = vmatprep.subr.bf16.mxu0 %v844_v0 }
  0x61   :  { %723 = vmatprep.subr.bf16.mxu1 %v844_v0 }
  0x63   :  { %716 = vmatpush3.bf16.msra.mxu0 %v715_v39 }
  0x64   :  { %725 = vmatpush3.bf16.msra.mxu1 %v724_v41  ;;  %651 = vmatprep.subr.mxu0 %v846_v1 }
  0x65   :  { %668 = vmatprep.subr.mxu1 %v846_v1 }
  0x67   :  { %652 = vmatpush3.msk.msra.mxu0 %vm110_vm1, %v290_v42 }
  0x68   :  { %669 = vmatpush3.msk.msra.mxu1 %vm110_vm1, %v283_v43  ;;  %726 = vmatprep.subr.bf16.mxu0 %v844_v0 }
 0x12c   :  { %v180_v46 = vpop.f32.mrb[0].mxu0 }
 0x12d   :  { %v181_v49 = vadd.f32 %v551_v44, %v180_v46  ;;  %v272_v50 = vpop.f32.mrb[0].mxu1  ;;  %v621_v51 = vpop.f32.mrb[1].mxu0 }
 0x12e   :  { %v273_v52 = vadd.f32 %v554_v45, %v272_v50  ;;  %v638_v53 = vpop.f32.mrb[1].mxu1 }
 0x12f   :  { %v184_v54 = vmax.f32 %v181_v49, 0.0 }
 0x130   :  { %v276_v56 = vmax.f32 %v273_v52, 0.0 }
 0x131   :  { %671 = vmatmul.mubr.msk.f32.vlgmr.msra.gmra.mrb[2].mxu1 %vm106_vm2, %v184_v54 }
 0x132   :  { %654 = vmatmul.mubr.msk.f32.vlgmr.msra.gmra.mrb[2].mxu0 %vm106_vm2, %v276_v56 }
 0x133   :  { %728 = vmatpush3.bf16.msra.mxu0 %v727_v55  ;;  %687 = vmatprep.mubr.msk.f32.mxu0 %vm845_vm0, %v846_v1 }
 0x134   :  { %729 = vmatprep.subr.bf16.mxu0 %v844_v0 }
 0x137   :  { %731 = vmatpush3.bf16.msra.mxu0 %v730_v59 }
 0x138   :  { %732 = vmatprep.subr.bf16.mxu0 %v844_v0 }
 0x13b   :  { %734 = vmatpush3.bf16.msra.mxu0 %v733_v62 }
 0x13c   :  { %685 = vmatprep.subr.mxu0 %v846_v1  ;;  %v562_v1 = vld [vmem:[%s1074_s10] ss:$0 sm:$0xff] }
 0x13f   :  { %686 = vmatpush3.msk.msra.mxu0 %vm110_vm1, %v458_v63 }
 0x204   :  { %v439_v2 = vpop.f32.mrb[2].mxu1 }
 0x205   :  { %v363_v0 = vpop.f32.mrb[2].mxu0  ;;  %v672_v4 = vpop.f32.mrb[3].mxu1 }
 0x206   :  { %v440_v5 = vadd.f32 %v439_v2, %v363_v0  ;;  %v655_v6 = vpop.f32.mrb[3].mxu0 }
 0x208   :  { %v450_v7 = vadd.f32 %v561_v3, %v440_v5 }
 0x20a   :  { %v451_v8 = vmax.f32 %v450_v7, 0.0 }
 0x20c   :  { %688 = vmatmul.mubr.msk.f32.vlgmr.msra.gmra.mrb[4].mxu0 %vm106_vm2, %v451_v8 }
 0x2df   :  { %v538_v9 = vpop.f32.mrb[4].mxu0 }
 0x2e0   :  { %v539_v10 = vadd.f32 %v562_v1, %v538_v9  ;;  %v689_v11 = vpop.f32.mrb[5].mxu0 }
 0x2e2   :  { %543 = vst.msk [vmem:[%s1075_s11] sm:$0xff] %vm542_vm3, %v539_v10 }
 0x2e3   :  { %548 = vsyncpa [#allocation3], 1 }
 0x2e4   :  { %549 = vsyncpa [#allocation5], 1 }
 0x2e5   :  { %550 = vsyncpa [#allocation8], 1 }

</bundles_post_ra>
